<compile_context>
chip_gen: v7x
topology: tpu7x:2x2x1
jax: 0.10.0
libtpu: 0.0.40
codegen_flags: <defaults>
</compile_context>

<pallas_src>
import jax
import jax.numpy as jnp
from jax.experimental import pallas as pl
from jax.experimental.pallas import tpu as pltpu

NEG_SLOPE = 0.2    # PyG GATConv default LeakyReLU negative_slope
LN_EPS = 1e-5      # nn.LayerNorm default eps
MASK_VAL = -1e30   # additive bias for non-edges


def _make_proj_kernel(num_heads: int, head_dim: int):
    """x_tile @ W_big -> heads [H,TM,F], residual [TM,HF], a_src [TM,H], a_dst [TM,H]."""
    H, F = num_heads, head_dim
    HF = H * F

    def kernel(x_ref, w_ref, xp_ref, res_ref, asrc_ref, adst_ref):
        # One MXU pass yields projection, residual projection and both score halves.
        y = jnp.dot(x_ref[...], w_ref[...], preferred_element_type=jnp.float32)
        # Split heads into the [H, TM, F] layout the attention kernel consumes
        # (static slices; no concatenate / per-tile transpose on the hot path later).
        for h in range(H):
            xp_ref[h, :, :] = y[:, h * F:(h + 1) * F]
        res_ref[...] = y[:, HF:2 * HF]
        asrc_ref[...] = y[:, 2 * HF:2 * HF + H]
        adst_ref[...] = y[:, 2 * HF + H:2 * HF + 2 * H]

    return kernel


def _make_attn_kernel(num_heads: int, head_dim: int):
    """Masked multi-head attention + aggregation + residual + LayerNorm + ReLU."""
    H, F = num_heads, head_dim
    HF = H * F

    def kernel(xp_ref, asrc_ref, adst_ref, res_ref, adjb_ref, prm_ref, out_ref):
        # One transpose for ALL heads (not per head): scores -> heads-leading layout.
        a_src_t = asrc_ref[...].T                      # [H, N]  (sources on lanes)
        a_dst_t = adst_ref[...].T                      # [H, TM]
        adj_b = adjb_ref[...].astype(jnp.float32)      # [TM, N] additive 0 / -1e30

        # e[h, i, j] = LeakyReLU(a_dst[i, h] + a_src[j, h]) + mask[i, j]
        e = a_dst_t[:, :, None] + a_src_t[:, None, :]  # [H, TM, N]
        e = jnp.where(e >= 0, e, NEG_SLOPE * e)
        e = e + adj_b[None, :, :]

        m = jnp.max(e, axis=-1, keepdims=True)         # [H, TM, 1]
        p = jnp.exp(e - m)                             # unnormalized attention
        s = jnp.sum(p, axis=-1, keepdims=True)

        # Batched per-head aggregation on the MXU with deferred normalization.
        acc = jax.lax.dot_general(
            p, xp_ref[...],
            dimension_numbers=(((2,), (1,)), ((0,), (0,))),
            preferred_element_type=jnp.float32)        # [H, TM, F]
        acc = acc * pl.reciprocal(s, approx=True)      # EUP reciprocal

        # TODO(synk): GATConv attention dropout omitted (eval-mode semantics).
        for h in range(H):                             # static-slice head writes
            out_ref[:, h * F:(h + 1) * F] = acc[h]

        prm = prm_ref[...]                             # [3, HF] packed params
        bias = prm[0:1, :]     # GATConv bias + residual Linear bias (pre-summed)
        gamma = prm[1:2, :]
        beta = prm[2:3, :]

        v = out_ref[...] + res_ref[...] + bias         # GAT output + residual
        mean = jnp.mean(v, axis=-1, keepdims=True)
        c = v - mean
        var = jnp.mean(c * c, axis=-1, keepdims=True)
        y = c * jax.lax.rsqrt(var + LN_EPS)
        y = y * gamma + beta
        # ReLU; output dropout is identity in eval mode.
        out_ref[...] = jnp.maximum(y, 0.0)

    return kernel


def _pick_tile_m(n: int) -> int:
    # Multiples of 16 keep the bf16 adjacency block aligned to its (16, 128) packing.
    for t in (512, 256, 128, 64, 32, 16):
        if n % t == 0:
            return t
    return n   # fall back to the full dim (always a legal block shape)


def multi_head_gat_layer(x, edge_index, params, *, heads, out_channels, tile_m=None):
    """Pallas implementation of MultiHeadGATLayer.forward (eval mode)."""
    N, C = x.shape
    H, F = heads, out_channels
    HF = H * F
    P = 2 * HF + 2 * H

    if tile_m is None:
        tile_m = _pick_tile_m(N)
    if N % tile_m != 0:
        tile_m = N
    grid = (N // tile_m,)

    x = x.astype(jnp.float32)

    # ---- parameter folding (once per layer, outside the kernels) -----------------
    att_src = params["att_src"].astype(jnp.float32)            # [H, F]
    att_dst = params["att_dst"].astype(jnp.float32)            # [H, F]
    eye_h = jnp.eye(H, dtype=jnp.float32)
    a_src_mat = (att_src[:, :, None] * eye_h[:, None, :]).reshape(HF, H)  # block-diag
    a_dst_mat = (att_dst[:, :, None] * eye_h[:, None, :]).reshape(HF, H)
    w_lin = params["w_lin"].astype(jnp.float32)                # [C, HF]
    w_res = params["w_res"].astype(jnp.float32)                # [C, HF]
    w_big = jnp.concatenate(
        [w_lin, w_res, w_lin @ a_src_mat, w_lin @ a_dst_mat], axis=1)     # [C, P]

    prm = jnp.concatenate(
        [(params["bias"] + params["b_res"]).reshape(1, HF),
         params["gamma"].reshape(1, HF),
         params["beta"].reshape(1, HF)], axis=0).astype(jnp.float32)      # [3, HF]

    # ---- dense adjacency as a bf16 additive bias (adj[i, j]: edge j -> i) --------
    src, dst = edge_index[0], edge_index[1]
    adj = jnp.zeros((N, N), jnp.float32).at[dst, src].set(1.0)
    adj = jnp.maximum(adj, jnp.eye(N, dtype=jnp.float32))      # self-loops (PyG default)
    adj_bias = jnp.where(adj > 0, 0.0, MASK_VAL).astype(jnp.bfloat16)

    # ---- kernel 1: fused projection (GAT linear + residual linear + scores) ------
    xp_heads, res, a_src, a_dst = pl.pallas_call(
        _make_proj_kernel(H, F),
        grid=grid,
        in_specs=[pl.BlockSpec((tile_m, C), lambda i: (i, 0)),
                  pl.BlockSpec((C, P), lambda i: (0, 0))],
        out_specs=(pl.BlockSpec((H, tile_m, F), lambda i: (0, i, 0)),
                   pl.BlockSpec((tile_m, HF), lambda i: (i, 0)),
                   pl.BlockSpec((tile_m, H), lambda i: (i, 0)),
                   pl.BlockSpec((tile_m, H), lambda i: (i, 0))),
        out_shape=(jax.ShapeDtypeStruct((H, N, F), jnp.float32),
                   jax.ShapeDtypeStruct((N, HF), jnp.float32),
                   jax.ShapeDtypeStruct((N, H), jnp.float32),
                   jax.ShapeDtypeStruct((N, H), jnp.float32)),
        compiler_params=pltpu.CompilerParams(
            dimension_semantics=("parallel",)),
    )(x, w_big)

    # ---- kernel 2: masked softmax attention + aggregation + residual + LN + ReLU -
    out = pl.pallas_call(
        _make_attn_kernel(H, F),
        grid=grid,
        in_specs=[pl.BlockSpec((H, N, F), lambda i: (0, 0, 0)),   # all-source features
                  pl.BlockSpec((N, H), lambda i: (0, 0)),         # a_src, all sources
                  pl.BlockSpec((tile_m, H), lambda i: (i, 0)),    # a_dst, row tile
                  pl.BlockSpec((tile_m, HF), lambda i: (i, 0)),   # residual, row tile
                  pl.BlockSpec((tile_m, N), lambda i: (i, 0)),    # adjacency bias tile
                  pl.BlockSpec((3, HF), lambda i: (0, 0))],       # packed bias/gamma/beta
        out_specs=pl.BlockSpec((tile_m, HF), lambda i: (i, 0)),
        out_shape=jax.ShapeDtypeStruct((N, HF), jnp.float32),
        compiler_params=pltpu.CompilerParams(
            dimension_semantics=("parallel",)),
    )(xp_heads, a_src, a_dst, res, adj_bias, prm)
    return out


def _reference(x, edge_index, params, *, heads, out_channels):
    """Pure-JAX reference mirroring PyG GATConv + residual + LayerNorm + ReLU."""
    N, _ = x.shape
    H, F = heads, out_channels
    src, dst = edge_index[0], edge_index[1]
    adj = jnp.zeros((N, N), jnp.float32).at[dst, src].set(1.0)
    adj = jnp.maximum(adj, jnp.eye(N, dtype=jnp.float32))

    xp = x @ params["w_lin"]                                   # [N, H*F]
    xp_h = xp.reshape(N, H, F)
    a_src = jnp.einsum("nhf,hf->nh", xp_h, params["att_src"])  # [N, H]
    a_dst = jnp.einsum("nhf,hf->nh", xp_h, params["att_dst"])  # [N, H]
    e = a_dst[:, None, :] + a_src[None, :, :]                  # [N, N, H]
    e = jnp.where(e >= 0, e, NEG_SLOPE * e)
    e = jnp.where(adj[:, :, None] > 0, e, MASK_VAL)
    e = e - jnp.max(e, axis=1, keepdims=True)
    p = jnp.exp(e)
    p = p / jnp.sum(p, axis=1, keepdims=True)
    gat = jnp.einsum("ijh,jhf->ihf", p, xp_h).reshape(N, H * F) + params["bias"]
    ident = x @ params["w_res"] + params["b_res"]
    v = gat + ident
    mean = jnp.mean(v, axis=-1, keepdims=True)
    var = jnp.mean((v - mean) ** 2, axis=-1, keepdims=True)
    y = (v - mean) / jnp.sqrt(var + LN_EPS) * params["gamma"] + params["beta"]
    return jnp.maximum(y, 0.0)


if __name__ == "__main__":
    # Small shapes consistent with the module's forward signature.
    N = 32            # num_nodes
    C = 16            # in_channels
    F = 8             # out_channels (per head)
    H = 4             # heads
    HF = H * F        # 32
    E_EXTRA = 32

    key = jax.random.PRNGKey(0)
    keys = jax.random.split(key, 10)

    # Node features.
    x = jax.random.normal(keys[0], (N, C), jnp.float32)

    # Edge index [2, num_edges]: a ring plus some random edges.
    ring_src = jnp.arange(N, dtype=jnp.int32)
    ring_dst = (ring_src + 1) % N
    extra_src = jax.random.randint(keys[1], (E_EXTRA,), 0, N, dtype=jnp.int32)
    extra_dst = jax.random.randint(keys[2], (E_EXTRA,), 0, N, dtype=jnp.int32)
    edge_index = jnp.stack([jnp.concatenate([ring_src, extra_src]),
                            jnp.concatenate([ring_dst, extra_dst])])

    # Deterministic parameter init (synthetic, not a checkpoint).
    params = {
        "w_lin":  0.2 * jax.random.normal(keys[3], (C, HF), jnp.float32),
        "att_src": 0.2 * jax.random.normal(keys[4], (H, F), jnp.float32),
        "att_dst": 0.2 * jax.random.normal(keys[5], (H, F), jnp.float32),
        "bias":   0.1 * jax.random.normal(keys[6], (1, HF), jnp.float32),
        "w_res":  0.2 * jax.random.normal(keys[7], (C, HF), jnp.float32),
        "b_res":  0.1 * jax.random.normal(keys[8], (1, HF), jnp.float32),
        "gamma":  jnp.ones((1, HF), jnp.float32),
        "beta":   jnp.zeros((1, HF), jnp.float32),
    }

    # tile_m=16 -> a 2-step row-tile grid at this toy size (exercises the tiling path).
    out = multi_head_gat_layer(x, edge_index, params,
                               heads=H, out_channels=F, tile_m=16)
    out = jax.block_until_ready(out)

    ref = _reference(x, edge_index, params, heads=H, out_channels=F)
    assert out.shape == (N, HF)
    # Tolerance relaxed vs f32-exact because the kernel uses the approximate EUP
    # reciprocal (pl.reciprocal(approx=True)) for the deferred softmax normalization.
    assert jnp.allclose(out, ref, atol=1e-2, rtol=1e-2), "mismatch vs reference"

    print("KERNEL_OK")
</pallas_src>

<mosaic_0001>
module attributes {stable_mosaic.version = 11 : i64} {
  func.func @kernel(%arg0: i32, %arg1: memref<16x16xf32, #tpu.memory_space<vmem>>, %arg2: memref<16x72xf32, #tpu.memory_space<vmem>>, %arg3: memref<4x16x8xf32, #tpu.memory_space<vmem>>, %arg4: memref<16x32xf32, #tpu.memory_space<vmem>>, %arg5: memref<16x4xf32, #tpu.memory_space<vmem>>, %arg6: memref<16x4xf32, #tpu.memory_space<vmem>>) attributes {dimension_semantics = [#tpu.dimension_semantics<parallel>], iteration_bounds = array<i64: 2>, scalar_prefetch = 0 : i64, scratch_operands = 0 : i64, tpu.core_type = #tpu.core_type<tc>, window_params = [{transform_indices = @transform_0, window_bounds = array<i64: 16, 16>}, {pipeline_mode = #tpu.pipeline_mode<synchronous>, transform_indices = @transform_1, window_bounds = array<i64: 16, 72>}, {transform_indices = @transform_2, window_bounds = array<i64: 4, 16, 8>}, {transform_indices = @transform_3, window_bounds = array<i64: 16, 32>}, {transform_indices = @transform_4, window_bounds = array<i64: 16, 4>}, {transform_indices = @transform_5, window_bounds = array<i64: 16, 4>}]} {
    %c0 = arith.constant 0 : index
    %c0_0 = arith.constant 0 : index
    %0 = vector.load %arg1[%c0, %c0_0] : memref<16x16xf32, #tpu.memory_space<vmem>>, vector<16x16xf32>
    %c0_1 = arith.constant 0 : index
    %c0_2 = arith.constant 0 : index
    %1 = vector.load %arg2[%c0_1, %c0_2] : memref<16x72xf32, #tpu.memory_space<vmem>>, vector<16x72xf32>
    %cst = arith.constant dense<0.000000e+00> : vector<16x72xf32>
    %2 = tpu.matmul %0, %1, %cst {dimension_numbers = #tpu.dot_dimension_numbers<[1], [0], [0], [1], [0, 0, 1, 1], [], []>} : vector<16x16xf32>, vector<16x72xf32>, vector<16x72xf32> -> vector<16x72xf32>
    %3 = vector.extract_strided_slice %2 {offsets = [0, 0], sizes = [16, 8], strides = [1, 1]} : vector<16x72xf32> to vector<16x8xf32>
    %c0_3 = arith.constant 0 : index
    %c0_4 = arith.constant 0 : index
    %c0_5 = arith.constant 0 : index
    %4 = vector.load %arg3[%c0_3, %c0_4, %c0_5] : memref<4x16x8xf32, #tpu.memory_space<vmem>>, vector<1x16x8xf32>
    %5 = vector.shape_cast %4 : vector<1x16x8xf32> to vector<16x8xf32>
    %6 = vector.shape_cast %3 : vector<16x8xf32> to vector<1x16x8xf32>
    tpu.vector_store %arg3[%c0_3, %c0_4, %c0_5], %6 {strides = array<i32>} : memref<4x16x8xf32, #tpu.memory_space<vmem>>, vector<1x16x8xf32>,
    %7 = vector.extract_strided_slice %2 {offsets = [0, 8], sizes = [16, 8], strides = [1, 1]} : vector<16x72xf32> to vector<16x8xf32>
    %c1 = arith.constant 1 : index
    %c0_6 = arith.constant 0 : index
    %c0_7 = arith.constant 0 : index
    %8 = vector.load %arg3[%c1, %c0_6, %c0_7] : memref<4x16x8xf32, #tpu.memory_space<vmem>>, vector<1x16x8xf32>
    %9 = vector.shape_cast %8 : vector<1x16x8xf32> to vector<16x8xf32>
    %10 = vector.shape_cast %7 : vector<16x8xf32> to vector<1x16x8xf32>
    tpu.vector_store %arg3[%c1, %c0_6, %c0_7], %10 {strides = array<i32>} : memref<4x16x8xf32, #tpu.memory_space<vmem>>, vector<1x16x8xf32>,
    %11 = vector.extract_strided_slice %2 {offsets = [0, 16], sizes = [16, 8], strides = [1, 1]} : vector<16x72xf32> to vector<16x8xf32>
    %c2 = arith.constant 2 : index
    %c0_8 = arith.constant 0 : index
    %c0_9 = arith.constant 0 : index
    %12 = vector.load %arg3[%c2, %c0_8, %c0_9] : memref<4x16x8xf32, #tpu.memory_space<vmem>>, vector<1x16x8xf32>
    %13 = vector.shape_cast %12 : vector<1x16x8xf32> to vector<16x8xf32>
    %14 = vector.shape_cast %11 : vector<16x8xf32> to vector<1x16x8xf32>
    tpu.vector_store %arg3[%c2, %c0_8, %c0_9], %14 {strides = array<i32>} : memref<4x16x8xf32, #tpu.memory_space<vmem>>, vector<1x16x8xf32>,
    %15 = vector.extract_strided_slice %2 {offsets = [0, 24], sizes = [16, 8], strides = [1, 1]} : vector<16x72xf32> to vector<16x8xf32>
    %c3 = arith.constant 3 : index
    %c0_10 = arith.constant 0 : index
    %c0_11 = arith.constant 0 : index
    %16 = vector.load %arg3[%c3, %c0_10, %c0_11] : memref<4x16x8xf32, #tpu.memory_space<vmem>>, vector<1x16x8xf32>
    %17 = vector.shape_cast %16 : vector<1x16x8xf32> to vector<16x8xf32>
    %18 = vector.shape_cast %15 : vector<16x8xf32> to vector<1x16x8xf32>
    tpu.vector_store %arg3[%c3, %c0_10, %c0_11], %18 {strides = array<i32>} : memref<4x16x8xf32, #tpu.memory_space<vmem>>, vector<1x16x8xf32>,
    %19 = vector.extract_strided_slice %2 {offsets = [0, 32], sizes = [16, 32], strides = [1, 1]} : vector<16x72xf32> to vector<16x32xf32>
    %c0_12 = arith.constant 0 : index
    %c0_13 = arith.constant 0 : index
    %20 = vector.load %arg4[%c0_12, %c0_13] : memref<16x32xf32, #tpu.memory_space<vmem>>, vector<16x32xf32>
    tpu.vector_store %arg4[%c0_12, %c0_13], %19 {strides = array<i32>} : memref<16x32xf32, #tpu.memory_space<vmem>>, vector<16x32xf32>,
    %21 = vector.extract_strided_slice %2 {offsets = [0, 64], sizes = [16, 4], strides = [1, 1]} : vector<16x72xf32> to vector<16x4xf32>
    %c0_14 = arith.constant 0 : index
    %c0_15 = arith.constant 0 : index
    %22 = vector.load %arg5[%c0_14, %c0_15] : memref<16x4xf32, #tpu.memory_space<vmem>>, vector<16x4xf32>
    tpu.vector_store %arg5[%c0_14, %c0_15], %21 {strides = array<i32>} : memref<16x4xf32, #tpu.memory_space<vmem>>, vector<16x4xf32>,
    %23 = vector.extract_strided_slice %2 {offsets = [0, 68], sizes = [16, 4], strides = [1, 1]} : vector<16x72xf32> to vector<16x4xf32>
    %c0_16 = arith.constant 0 : index
    %c0_17 = arith.constant 0 : index
    %24 = vector.load %arg6[%c0_16, %c0_17] : memref<16x4xf32, #tpu.memory_space<vmem>>, vector<16x4xf32>
    tpu.vector_store %arg6[%c0_16, %c0_17], %23 {strides = array<i32>} : memref<16x4xf32, #tpu.memory_space<vmem>>, vector<16x4xf32>,
    return
  }
  func.func @transform_0(%arg0: i32) -> (i32, i32) {
    %c0_i32 = arith.constant 0 : i32
    %c0_i32_0 = arith.constant 0 : i32
    return %arg0, %c0_i32 : i32, i32
  }
  func.func @transform_1(%arg0: i32) -> (i32, i32) {
    %c0_i32 = arith.constant 0 : i32
    %c0_i32_0 = arith.constant 0 : i32
    %c0_i32_1 = arith.constant 0 : i32
    return %c0_i32, %c0_i32_0 : i32, i32
  }
  func.func @transform_2(%arg0: i32) -> (i32, i32, i32) {
    %c0_i32 = arith.constant 0 : i32
    %c0_i32_0 = arith.constant 0 : i32
    %c0_i32_1 = arith.constant 0 : i32
    return %c0_i32, %arg0, %c0_i32_0 : i32, i32, i32
  }
  func.func @transform_3(%arg0: i32) -> (i32, i32) {
    %c0_i32 = arith.constant 0 : i32
    %c0_i32_0 = arith.constant 0 : i32
    return %arg0, %c0_i32 : i32, i32
  }
  func.func @transform_4(%arg0: i32) -> (i32, i32) {
    %c0_i32 = arith.constant 0 : i32
    %c0_i32_0 = arith.constant 0 : i32
    return %arg0, %c0_i32 : i32, i32
  }
  func.func @transform_5(%arg0: i32) -> (i32, i32) {
    %c0_i32 = arith.constant 0 : i32
    %c0_i32_0 = arith.constant 0 : i32
    return %arg0, %c0_i32 : i32, i32
  }
}

</mosaic_0001>

<bundles_post_ra>
// kernel: tpu_custom_call.1
= control target key start
LH: loop header
LB: loop body
LE: loop exit
PB: predicated region body
PF: predicated region fallthrough
CT: control target
= control target key end

     0   :  { %11 = vsyncpa [#allocation4], 0  ;;  %s1005_s0 = inlined_call_operand.vmem [shape: f32[32,16], index: 0, kind: input, shape index: {}]   ;;  %s1006_s1 = inlined_call_operand.vmem [shape: f32[16,72], index: 1, kind: input, shape index: {}]   ;;  %s1007_s2 = inlined_call_operand.vmem [shape: f32[4,32,8], index: 2, kind: output, shape index: {0}]   ;;  %s1008_s3 = inlined_call_operand.hbm [shape: f32[32,32], index: 3, kind: output, shape index: {1}]   ;;  %s1009_s4 = inlined_call_operand.vmem [shape: f32[32,4], index: 4, kind: output, shape index: {2}]   ;;  %s1010_s5 = inlined_call_operand.vmem [shape: f32[32,4], index: 5, kind: output, shape index: {3}]  }
   0x1   :  { %13 = vsyncpa [#allocation4 + $0x1], 0  ;;  %s841_s18 = smov 0   ;;  %s843_s19 = smov 0  }
   0x2   :  { %s845_s20 = smov 0   ;;  %s847_s21 = smov 0  }
   0x3 LB: > { %s862_s22 = sadd.s32 4294967295, %s800_s21   ;;  %s646_s23 = sadd.s32 4294967294, %s800_s21   ;;  %s800_s21 = sphi %s847_s21, %s1016_s21   ;;  %s796_s20 = sphi %s845_s20, %s1015_s20   ;;  %s792_s19 = sphi %s843_s19, %s1014_s19   ;;  %s788_s18 = sphi %s841_s18, %s1013_s18  }
   0x4   : > { %s866_s24 = sadd.s32 1, %s800_s21   ;;  %s73_s25 = sadd.s32 1, %s796_s20 }
   0x5   : > { %s70_s26 = ssub.s32 %s800_s21, %s866_s24  ;;  %p83_p0 = scmp.ne.s32.totalorder %s796_s20, %s792_s19 }
   0x6   : > { %p71_p1 = scmp.eq.s32.totalorder %s70_s26, 0  ;;  %p84_p2 = scmp.eq.s32.totalorder %s862_s22, 1 }
   0x7   : > { %p115_p3 = scmp.ne.s32.totalorder %s792_s19, %s788_s18  ;;  %p116_p4 = scmp.eq.s32.totalorder %s646_s23, 1 }
   0x8   : > { %s877_s27 = scalar_select %p71_p1, %s796_s20, %s73_s25  }
   0x9   : > { %p879_p5 = por %p84_p2, %p83_p0  ;;  %p883_p6 = por %p116_p4, %p115_p3 }
   0xa   : > { %p649_p7 = scmp.ge.s32.totalorder %s800_s21, 1  ;;  %p198_p8 = scmp.lt.s32.totalorder %s800_s21, 3 }
   0xc   : > { %p199_p9 = pnand %p649_p7, %p198_p8 }
   0xd   : > { %v262_v0 = vld [vmem:[%s1006_s1] sm:$0xff] (!%p199_p9)  ;;  %v263_v1 = vld [vmem:[%s1006_s1 + $0x8] sm:$0xff] (!%p199_p9)  ;;  %s652_s9 = sshll.u32 (!%p199_p9), %s862_s22, 1  ;;  %vm264_vm0 = vcmask (!%p199_p9), 130048   ;;  %s903_s14 = sand.u32 (!%p199_p9), 1, %s792_s19   ;;  %vm346_vm1 = vcmask (!%p199_p9), 64512  }
   0xe   : > { %202 = sbr.rel (%p199_p9) target bundleno = 403 (0x193), region = 28  ;;  %v687_v2 = vpack.c.bf16 (!%p199_p9), %v263_v1, %v262_v0  ;;  %p241_p10 = scmp.lt.s32.totalorder (!%p199_p9), %s652_s9, 3  ;;  %vm393_vm2 = vcmask (!%p199_p9), 31744   ;;  %vm384_vm3 = vcmask (!%p199_p9), 261120  }
   0xf   : > { %s650_s15 = sshll.u32 (!%p199_p9), %s903_s14, 6  ;;  %s802_s16 = smov (!%p199_p9), 120  }
  0x10   : > { %688 = vmatprep.subr.bf16.mxu0 (!%p199_p9), %v687_v2  ;;  %s906_s17 = scalar_lea.vmem (!%p199_p9), [#allocation2], %s650_s15  ;;  %s803_s23 = smov (!%p199_p9), 64  }
  0x11   : > { %690 = vmatpush3.bf16.msra.mxu0 (!%p199_p9), %v687_v2  ;;  %s804_s25 = smov (!%p199_p9), 112   ;;  %s805_s26 = smov (!%p199_p9), 60  }
  0x12   : > { %s806_s30 = smov (!%p199_p9), 104   ;;  %s807_s6 = smov (!%p199_p9), 96  }
  0x13   : > { %s651_s15 = sshll.u32 (!%p199_p9), %s903_s14, 4 }
  0x15   : > { %s1018_s9 = smov (!%p241_p10, %s652_s9), 3 }
  0x16   : > { %s896_s10 = sshll.u32 %s1018_s9, 3 }
  0x17   : > { %s244_s13 = scalar_lea.vmem %s1005_s0, %s896_s10  ;;  %s252_s9 = scalar_lea.vmem %s1009_s4, %s896_s10 }
  0x18   : > { %v260_v3 = vld [vmem:[%s244_s13] sm:$0xff]  ;;  %v261_v4 = vld [vmem:[%s244_s13 + $0x8] sm:$0xff]  ;;  %s258_s13 = scalar_lea.vmem %s1010_s5, %s896_s10  ;;  %s409_s10 = scalar_lea.sflag [#allocation4], %s903_s14 }
  0x19   : > { %684 = vmatprep.mubr.msk.f32.mxu0 %vm264_vm0, %v260_v3 }
  0x1a   : > { %685 = vmatmul.mubr.msk.f32.vlgmr.msra.gmra.mrb[0].mxu0 %vm264_vm0, %v261_v4 }
  0xed   : > { %v686_v5 = vpop.f32.mrb[0].mxu0 }
  0xee   : > { %353 = vrot.lane.b32.xlu1 %v686_v5, %s802_s16  ;;  %v337_v6 = vpop.f32.mrb[1].mxu0  ;;  %348 = vst.msk [vmem:[%s906_s17 + $0x8] sm:$0xff] %vm346_vm1, %v686_v5 }
  0xef   : > { %387 = vrot.lane.b32.xlu0 %v337_v6, %s803_s23  ;;  %347 = vst.msk [vmem:[%s906_s17] sm:$0xff] %vm346_vm1, %v337_v6 }
  0xf2   : > { %362 = vrot.lane.b32.xlu1 %v686_v5, %s804_s25 }
  0xf3   : > { %396 = vrot.lane.b32.xlu0 %v337_v6, %s805_s26 }
  0xf5   : > { %v472_v20 = vld [vmem:[%s906_s17 + $0x8] sm:$0xff] (%p879_p5) }
  0xf6   : > { %371 = vrot.lane.b32.xlu1 %v686_v5, %s806_s30  ;;  %v470_v19 = vld [vmem:[%s906_s17] sm:$0xff] (%p879_p5) }
  0xf7   : > { %360 = vrot.lane.b32.xlu0 %v337_v6, %s804_s25 }
  0xfa   : > { %380 = vrot.lane.b32.xlu1 %v686_v5, %s807_s6 }
  0xfb   : > { %369 = vrot.lane.b32.xlu0 %v337_v6, %s806_s30 }
  0xfe   : > { %351 = vrot.lane.b32.xlu1 %v337_v6, %s802_s16  ;;  %s931_s16 = scalar_lea.vmem [#allocation3], %s651_s15 }
  0xff   : > { %378 = vrot.lane.b32.xlu0 %v337_v6, %s807_s6 }
 0x102   : > { %398 = vrot.lane.b32.xlu1 %v686_v5, %s805_s26 }
 0x103   : > { %389 = vrot.lane.b32.xlu0 %v686_v5, %s803_s23  ;;  %s674_s23 = sshll.u32 (%p879_p5), %s862_s22, 4 }
 0x104   : > { %s428_s30 = scalar_lea.vmem (%p879_p5), %s1007_s2, %s674_s23 }
 0x105   : > { %471 = vst [vmem:[%s428_s30] sm:$0xff] (%p879_p5), %v470_v19  ;;  %473 = vst [vmem:[%s428_s30 + $0x8] sm:$0xff] (%p879_p5), %v472_v20 }
 0x160   : > { %v354_v7 = vpop.permute.xlu1 %353 }
 0x161   : > { %661 = vst.msk [vmem:[%s906_s17 + $0x18] sm:$0xff] %vm346_vm1, %v354_v7  ;;  %v388_v8 = vpop.permute.xlu0 %387 }
 0x162   : > { %394 = vst.msk [vmem:[%s252_s9] sm:$0xff] %vm393_vm2, %v388_v8 }
 0x164   : > { %v363_v9 = vpop.permute.xlu1 %362 }
 0x165   : > { %663 = vst.msk [vmem:[%s906_s17 + $0x28] sm:$0xff] %vm346_vm1, %v363_v9  ;;  %v397_v10 = vpop.permute.xlu0 %396 }
 0x166   : > { %402 = vst.msk [vmem:[%s258_s13] sm:$0xff] %vm393_vm2, %v397_v10 }
 0x168   : > { %v372_v11 = vpop.permute.xlu1 %371  ;;  %v476_v22 = vld [vmem:[%s906_s17 + $0x18] sm:$0xff] (%p879_p5) }
 0x169   : > { %665 = vst.msk [vmem:[%s906_s17 + $0x38] sm:$0xff] %vm346_vm1, %v372_v11  ;;  %v361_v12 = vpop.permute.xlu0 %360  ;;  %477 = vst [vmem:[%s428_s30 + $0x28] sm:$0xff] (%p879_p5), %v476_v22 }
 0x16a   : > { %662 = vst.msk [vmem:[%s906_s17 + $0x20] sm:$0xff] %vm346_vm1, %v361_v12 }
 0x16c   : > { %v381_v13 = vpop.permute.xlu1 %380  ;;  %v480_v24 = vld [vmem:[%s906_s17 + $0x28] sm:$0xff] (%p879_p5) }
 0x16d   : > { %386 = vst.msk [vmem:[%s931_s16 + $0x8] sm:$0xff] %vm384_vm3, %v381_v13  ;;  %v370_v14 = vpop.permute.xlu0 %369  ;;  %481 = vst [vmem:[%s428_s30 + $0x48] sm:$0xff] (%p879_p5), %v480_v24 }
 0x16e   : > { %664 = vst.msk [vmem:[%s906_s17 + $0x30] sm:$0xff] %vm346_vm1, %v370_v14 }
 0x170   : > { %v352_v15 = vpop.permute.xlu1 %351  ;;  %425 = sbr.rel (!%p879_p5) target bundleno = 378 (0x17a), region = 32  ;;  %v484_v26 = vld [vmem:[%s906_s17 + $0x38] sm:$0xff] (%p879_p5) }
 0x171   : > { %660 = vst.msk [vmem:[%s906_s17 + $0x10] sm:$0xff] %vm346_vm1, %v352_v15  ;;  %v379_v16 = vpop.permute.xlu0 %378  ;;  %v478_v23 = vld [vmem:[%s906_s17 + $0x20] sm:$0xff] (%p879_p5)  ;;  %485 = vst [vmem:[%s428_s30 + $0x68] sm:$0xff] (%p879_p5), %v484_v26 }
 0x172   : > { %385 = vst.msk [vmem:[%s931_s16] sm:$0xff] %vm384_vm3, %v379_v16  ;;  %479 = vst [vmem:[%s428_s30 + $0x40] sm:$0xff] (%p879_p5), %v478_v23 }
 0x174   : > { %v399_v17 = vpop.permute.xlu1 %398 }
 0x175   : > { %403 = vst.msk [vmem:[%s258_s13 + $0x8] sm:$0xff] %vm393_vm2, %v399_v17  ;;  %v390_v18 = vpop.permute.xlu0 %389  ;;  %v482_v25 = vld [vmem:[%s906_s17 + $0x30] sm:$0xff] (%p879_p5) }
 0x176   : > { %395 = vst.msk [vmem:[%s252_s9 + $0x8] sm:$0xff] %vm393_vm2, %v390_v18  ;;  %483 = vst [vmem:[%s428_s30 + $0x60] sm:$0xff] (%p879_p5), %v482_v25 }
 0x178   : > { %v474_v21 = vld [vmem:[%s906_s17 + $0x10] sm:$0xff] }
 0x179   : > { %475 = vst [vmem:[%s428_s30 + $0x20] sm:$0xff] %v474_v21 }
 0x17a PF: > { %s675_s6 = sshll.u32 %s862_s22, 8  ;;  %s498_s7 = sshll.u32 %s931_s16, 4  ;;  %s963_s7 = int_to_ptr.vmem [resolvable:$true] %s498_s7 }
 0x17b   : > { %s961_s11 = scalar_lea.hbm %s1008_s3, %s675_s6  ;;  %s738_s12 = scalar_lea.vmem %s963_s7, 256 }
 0x17c   : > { %p739_p11 = scmp.ne.s32.totalorder %s963_s7, %s738_s12  ;;  %s808_s17 = smov [#allocation3]  }
 0x17d   : > { %s742_s13 = sshll.u32 %s808_s17, 4  ;;  %s743_s13 = int_to_ptr.vmem [resolvable:$false] %s742_s13 }
 0x17e   : > { %p740_p12 = pnand %p739_p11, %p879_p5  ;;  %s744_s22 = scalar_lea.vmem %s743_s13, 512 }
 0x17f   : > { %p745_p0 = scmp.lt.s32.totalorder %s963_s7, %s743_s13  ;;  %p746_p1 = scmp.lt.s32.totalorder %s744_s22, %s738_s12 }
 0x180   : > { %p741_p13 = pneg %p740_p12 }
 0x181   : > { %p747_p2 = por %p746_p1, %p745_p0 }
 0x183   : > { %p748_p3 = pnand %p747_p2, %p741_p13 }
 0x185   : > { %751 = shalt.err (!%p748_p3)
}
 0x186   : > { %s752_s15 = scalar_lea.hbm %s961_s11, 256  ;;  %s756_s25 = scalar_lea.hbm %s1008_s3, 512 }
 0x187   : > { %p753_p4 = scmp.ne.s32.totalorder %s961_s11, %s752_s15  ;;  %p757_p9 = scmp.lt.u32.totalorder %s961_s11, %s1008_s3 }
 0x188   : > { %p758_p10 = scmp.lt.u32.totalorder %s756_s25, %s752_s15  ;;  %p760_p12 = scmp.lt.u32.totalorder %s752_s15, %s961_s11 }
 0x189   : > { %p754_p7 = pnand %p753_p4, %p879_p5 }
 0x18a   : > { %p759_p11 = por %p758_p10, %p757_p9 }
 0x18b   : > { %p755_p8 = pneg %p754_p7 }
 0x18c   : > { %p761_p13 = por %p760_p12, %p759_p11 }
 0x18e   : > { %p762_p0 = pnand %p761_p13, %p755_p8 }
 0x190   : > { %765 = shalt.err (!%p762_p0)
}
 0x191   : > { %s809_s6 = smov 128   ;;  %s810_s8 = smov 8  }
 0x192   : > { %691 = dma.vmem_to_hbm [thread:$0]  (%p879_p5), %s963_s7, 256, %s961_s11, %s409_s10, %s809_s6, %s809_s6, %s810_s8  }
 0x193 PF: > { %p697_p1 = scmp.ge.s32.totalorder %s800_s21, 2  ;;  %s528_s9 = sand.u32 1, %s788_s18  }
 0x194   : > { %s529_s12 = scalar_lea.sflag [#allocation4], %s528_s9 }
 0x195   : > { %p694_p2 = pnand %p697_p1, %p883_p6 }
 0x197   : > { %783 = dma.done.wait (!%p694_p2), %s529_s12, 256  }
 0x198   : > { %785 = vsyncadd (!%p694_p2), %s529_s12, 4294967040  ;;  %p16_p3 = scmp.ge.s32.totalorder %s866_s24, 4   ;;  %s1013_s18 = smov %s792_s19 }
 0x199   : > { %s1014_s19 = smov %s796_s20  ;;  %s1015_s20 = smov %s877_s27 }
 0x19a   : > { %s1016_s21 = smov %s866_s24  ;;  %18 = sbr.rel (!%p16_p3) target bundleno = 3 (0x3), region = 140 }
 0x1a1   :  { %550 = vsyncpa [#allocation4], 1 }
 0x1a2   :  { %552 = vsyncpa [#allocation4 + $0x1], 1 }

</bundles_post_ra>
